<compile_context>
chip_gen: v7x
topology: tpu7x:2x2x1
jax: 0.10.0
libtpu: 0.0.40
codegen_flags: <defaults>
</compile_context>

<pallas_src>
import functools

import jax
import jax.numpy as jnp
from jax.experimental import pallas as pl
from jax.experimental.pallas import tpu as pltpu

D_IN, D_HID, D_OUT = 32, 64, 16
PACK = 8                 # batch rows packed per lane-row
MAX_TILE_ROWS = 4096     # packed rows per step; ~21 MiB f32 << 32 MiB scoped VMEM


def _round_up(n, m):
    return ((n + m - 1) // m) * m


def pack_sigma_net_weights(w1_t, w2_t):
    """Expand [in,out] weights into PACK-way block-diagonal matrices.

    Call ONCE per weight set (outside the per-step path) and reuse the result:
    sigma_net_forward consumes the packed weights directly.
    """
    eye = jnp.eye(PACK)
    w1_bd = jnp.kron(eye.astype(w1_t.dtype), w1_t)   # (256, 512)
    w2_bd = jnp.kron(eye.astype(w2_t.dtype), w2_t)   # (512, 128)
    return w1_bd, w2_bd


def _sigma_net_kernel(x_ref, w1_ref, w2_ref, o_ref, *, mxu_bf16):
    # x_ref : (rows, 256)  8 batch rows per lane-row (lane-dense load)
    # w1_ref: (256, 512)   block-diagonal W1
    # w2_ref: (512, 128)   block-diagonal W2
    # o_ref : (rows, 128)  8 output rows per lane-row (lane-dense store)
    x = x_ref[...]
    w1 = w1_ref[...]
    w2 = w2_ref[...]
    if mxu_bf16:                          # bf16 MXU operands, f32 accumulation
        x = x.astype(jnp.bfloat16)
        w1 = w1.astype(jnp.bfloat16)
        w2 = w2.astype(jnp.bfloat16)
    h = jnp.dot(x, w1, preferred_element_type=jnp.float32)
    h = jnp.maximum(h, 0.0)               # ReLU in f32 (v5e VPU has no bf16)
    h = h.astype(w2.dtype)                # narrow only AFTER the ReLU
    y = jnp.dot(h, w2, preferred_element_type=jnp.float32)
    o_ref[...] = y.astype(o_ref.dtype)


def sigma_net_forward(x, w1_bd, w2_bd, *, tm=8192, mxu_bf16=False):
    """x: [B, 32]; w1_bd/w2_bd: packed weights from pack_sigma_net_weights.

    Returns [B, 16] in x.dtype.  Matmul accumulation is always f32.
    Works for arbitrary B (pads only to a multiple of PACK=8 rows).
    """
    B = x.shape[0]
    out_dtype = x.dtype

    # Pad only up to a multiple of PACK (never to a full tile): the partial
    # last grid block is handled by Pallas' boundary clipping.
    B_pad = _round_up(B, PACK)
    if B_pad != B:
        x = jnp.pad(x, ((0, B_pad - B), (0, 0)))
    rows_total = B_pad // PACK
    x_p = x.reshape(rows_total, PACK * D_IN)          # row-major reshape: free

    # Row-tile selection (in packed rows).  Big tiles amortize per-step
    # overhead; MAX_TILE_ROWS keeps per-step VMEM under the 32 MiB default
    # scoped limit (v7x physical VMEM is 64 MiB).  Sublane align: 8 f32/16 bf16.
    row_align = 16 if x_p.dtype == jnp.bfloat16 else 8
    target_rows = max(row_align, min(tm // PACK, MAX_TILE_ROWS))
    if rows_total <= target_rows:
        rows_tile = rows_total            # single step: block == full array
        grid_steps = 1
    else:
        # Force >=2 steps so the "parallel" batch axis can shard across v7x's
        # two TensorCores; prefer an even step count for load balance.
        rows_tile = _round_up(min(target_rows, pl.cdiv(rows_total, 2)), row_align)
        grid_steps = pl.cdiv(rows_total, rows_tile)
        if grid_steps % 2 == 1:
            alt_tile = _round_up(pl.cdiv(rows_total, grid_steps + 1), row_align)
            alt_steps = pl.cdiv(rows_total, alt_tile)
            if alt_steps % 2 == 0:
                rows_tile, grid_steps = alt_tile, alt_steps

    itemsize = jnp.dtype(x_p.dtype).itemsize
    w_itemsize = jnp.dtype(w1_bd.dtype).itemsize
    cost = pl.CostEstimate(
        # Executed (block-diagonal) FLOPs: PACK x the mathematical count.
        flops=2 * B_pad * PACK * (D_IN * D_HID + D_HID * D_OUT),
        transcendentals=0,
        bytes_accessed=B_pad * (D_IN + D_OUT) * itemsize
        + (w1_bd.size + w2_bd.size) * w_itemsize,
    )

    kernel = functools.partial(_sigma_net_kernel, mxu_bf16=mxu_bf16)
    out_p = pl.pallas_call(
        kernel,
        out_shape=jax.ShapeDtypeStruct((rows_total, PACK * D_OUT), out_dtype),
        grid_spec=pltpu.PrefetchScalarGridSpec(
            num_scalar_prefetch=0,
            grid=(grid_steps,),
            in_specs=[
                pl.BlockSpec((rows_tile, PACK * D_IN), lambda i: (i, 0)),
                # Weights are grid-invariant: single VMEM buffer, no per-step DMA.
                pl.BlockSpec((PACK * D_IN, PACK * D_HID), lambda i: (0, 0),
                             pipeline_mode=pl.Buffered(1)),
                pl.BlockSpec((PACK * D_HID, PACK * D_OUT), lambda i: (0, 0),
                             pipeline_mode=pl.Buffered(1)),
            ],
            out_specs=pl.BlockSpec((rows_tile, PACK * D_OUT), lambda i: (i, 0)),
        ),
        compiler_params=pltpu.CompilerParams(
            dimension_semantics=("parallel",),   # batch axis shards over 2 TCs on v7x
        ),
        cost_estimate=cost,
    )(x_p, w1_bd, w2_bd)

    # (B/8,128) -> (B,16) is again a free row-major reshape; drop pad rows.
    return out_p.reshape(B_pad, D_OUT)[:B]


def reference_forward(x, w1_t, w2_t):
    """Pure-JAX reference mirroring the kernel's dtype handling."""
    h = jnp.maximum(jnp.dot(x, w1_t, preferred_element_type=jnp.float32), 0.0)
    h = h.astype(w2_t.dtype)
    y = jnp.dot(h, w2_t, preferred_element_type=jnp.float32)
    return y.astype(x.dtype)


if __name__ == "__main__":
    key = jax.random.PRNGKey(0)
    kx, k1, k2 = jax.random.split(key, 3)

    # PyTorch Linear default init U(-1/sqrt(in), 1/sqrt(in)); stored [in, out].
    b1 = 1.0 / jnp.sqrt(jnp.float32(D_IN))
    b2 = 1.0 / jnp.sqrt(jnp.float32(D_HID))
    w1_t = jax.random.uniform(k1, (D_IN, D_HID), jnp.float32, -b1, b1)
    w2_t = jax.random.uniform(k2, (D_HID, D_OUT), jnp.float32, -b2, b2)
    w1_bd, w2_bd = pack_sigma_net_weights(w1_t, w2_t)   # packed ONCE, reused

    # --- small batch, f32, single grid step: tight correctness check -------
    B = 8
    x = jax.random.normal(kx, (B, D_IN), dtype=jnp.float32)
    out = jax.block_until_ready(sigma_net_forward(x, w1_bd, w2_bd))
    ref = reference_forward(x, w1_t, w2_t)
    assert out.shape == (B, D_OUT)
    assert jnp.allclose(out, ref, atol=2e-5, rtol=2e-5)

    # --- multi-step grid: even step count, partial last tile, PACK-only pad -
    B2 = 2500
    x2 = jax.random.normal(jax.random.PRNGKey(1), (B2, D_IN), dtype=jnp.float32)
    out2 = jax.block_until_ready(sigma_net_forward(x2, w1_bd, w2_bd, tm=1024))
    ref2 = reference_forward(x2, w1_t, w2_t)
    assert out2.shape == (B2, D_OUT)
    assert jnp.allclose(out2, ref2, atol=2e-5, rtol=2e-5)

    # --- bf16 I/O path ------------------------------------------------------
    B3 = 100
    x3 = jax.random.normal(jax.random.PRNGKey(2), (B3, D_IN), dtype=jnp.bfloat16)
    w1_bf, w2_bf = pack_sigma_net_weights(w1_t.astype(jnp.bfloat16),
                                          w2_t.astype(jnp.bfloat16))
    out3 = jax.block_until_ready(sigma_net_forward(x3, w1_bf, w2_bf))
    ref3 = reference_forward(x3, w1_t.astype(jnp.bfloat16),
                             w2_t.astype(jnp.bfloat16))
    assert out3.shape == (B3, D_OUT) and out3.dtype == jnp.bfloat16
    assert jnp.allclose(out3.astype(jnp.float32), ref3.astype(jnp.float32),
                        atol=2e-2, rtol=2e-2)

    # --- f32 inputs with bf16 MXU operands (v5e fast path), loose check ----
    out4 = jax.block_until_ready(
        sigma_net_forward(x2, w1_bd, w2_bd, tm=1024, mxu_bf16=True))
    assert jnp.allclose(out4, ref2, atol=5e-2, rtol=5e-2)

    print("KERNEL_OK")
</pallas_src>

<mosaic_0001>
module attributes {stable_mosaic.version = 11 : i64} {
  func.func @_sigma_net_kernel(%arg0: i32, %arg1: memref<1x256xf32, #tpu.memory_space<vmem>>, %arg2: memref<256x512xf32, #tpu.memory_space<vmem>>, %arg3: memref<512x128xf32, #tpu.memory_space<vmem>>, %arg4: memref<1x128xf32, #tpu.memory_space<vmem>>) attributes {dimension_semantics = [#tpu.dimension_semantics<parallel>], iteration_bounds = array<i64: 1>, scalar_prefetch = 0 : i64, scratch_operands = 0 : i64, tpu.core_type = #tpu.core_type<tc>, window_params = [{transform_indices = @transform_0, window_bounds = array<i64: 1, 256>}, {pipeline_mode = #tpu.pipeline_mode<synchronous>, transform_indices = @transform_1, window_bounds = array<i64: 256, 512>}, {pipeline_mode = #tpu.pipeline_mode<synchronous>, transform_indices = @transform_2, window_bounds = array<i64: 512, 128>}, {transform_indices = @transform_3, window_bounds = array<i64: 1, 128>}]} {
    %c0 = arith.constant 0 : index
    %c0_0 = arith.constant 0 : index
    %0 = vector.load %arg1[%c0, %c0_0] : memref<1x256xf32, #tpu.memory_space<vmem>>, vector<1x256xf32>
    %c0_1 = arith.constant 0 : index
    %c0_2 = arith.constant 0 : index
    %1 = vector.load %arg2[%c0_1, %c0_2] : memref<256x512xf32, #tpu.memory_space<vmem>>, vector<256x512xf32>
    %c0_3 = arith.constant 0 : index
    %c0_4 = arith.constant 0 : index
    %2 = vector.load %arg3[%c0_3, %c0_4] : memref<512x128xf32, #tpu.memory_space<vmem>>, vector<512x128xf32>
    %cst = arith.constant dense<0.000000e+00> : vector<1x512xf32>
    %3 = tpu.matmul %0, %1, %cst {dimension_numbers = #tpu.dot_dimension_numbers<[1], [0], [0], [1], [0, 0, 1, 1], [], []>} : vector<1x256xf32>, vector<256x512xf32>, vector<1x512xf32> -> vector<1x512xf32>
    %cst_5 = arith.constant 0.000000e+00 : f32
    %4 = vector.broadcast %cst_5 : f32 to vector<1x512xf32>
    %5 = arith.maximumf %3, %4 : vector<1x512xf32>
    %cst_6 = arith.constant dense<0.000000e+00> : vector<1x128xf32>
    %6 = tpu.matmul %5, %2, %cst_6 {dimension_numbers = #tpu.dot_dimension_numbers<[1], [0], [0], [1], [0, 0, 1, 1], [], []>} : vector<1x512xf32>, vector<512x128xf32>, vector<1x128xf32> -> vector<1x128xf32>
    %c0_7 = arith.constant 0 : index
    %c0_8 = arith.constant 0 : index
    %7 = vector.load %arg4[%c0_7, %c0_8] : memref<1x128xf32, #tpu.memory_space<vmem>>, vector<1x128xf32>
    tpu.vector_store %arg4[%c0_7, %c0_8], %6 {strides = array<i32>} : memref<1x128xf32, #tpu.memory_space<vmem>>, vector<1x128xf32>,
    return
  }
  func.func @transform_0(%arg0: i32) -> (i32, i32) {
    %c0_i32 = arith.constant 0 : i32
    %c0_i32_0 = arith.constant 0 : i32
    return %arg0, %c0_i32 : i32, i32
  }
  func.func @transform_1(%arg0: i32) -> (i32, i32) {
    %c0_i32 = arith.constant 0 : i32
    %c0_i32_0 = arith.constant 0 : i32
    %c0_i32_1 = arith.constant 0 : i32
    return %c0_i32, %c0_i32_0 : i32, i32
  }
  func.func @transform_2(%arg0: i32) -> (i32, i32) {
    %c0_i32 = arith.constant 0 : i32
    %c0_i32_0 = arith.constant 0 : i32
    %c0_i32_1 = arith.constant 0 : i32
    return %c0_i32, %c0_i32_0 : i32, i32
  }
  func.func @transform_3(%arg0: i32) -> (i32, i32) {
    %c0_i32 = arith.constant 0 : i32
    %c0_i32_0 = arith.constant 0 : i32
    return %arg0, %c0_i32 : i32, i32
  }
}

</mosaic_0001>

<bundles_post_ra>
// kernel: tpu_custom_call.1
= control target key start
LH: loop header
LB: loop body
LE: loop exit
PB: predicated region body
PF: predicated region fallthrough
CT: control target
= control target key end

     0   :  { %8 = vsyncpa [#allocation3], 0  ;;  %s1009_s0 = inlined_call_operand.hbm [shape: f32[1,256], index: 0, kind: input, shape index: {}]   ;;  %s1010_s1 = inlined_call_operand.hbm [shape: f32[256,512], index: 1, kind: input, shape index: {}]   ;;  %s1011_s2 = inlined_call_operand.hbm [shape: f32[512,128], index: 2, kind: input, shape index: {}]   ;;  %s1012_s3 = inlined_call_operand.hbm [shape: f32[1,128], index: 3, kind: output, shape index: {}]  }
   0x1   :  { %9 = vsyncpa [#allocation6], 0 }
   0x2   :  { %10 = vsyncpa [#allocation4], 0  ;;  %s925_s12 = smov [#allocation5]   ;;  %s831_s16 = scalar_lea.hbm %s1010_s1, 16384 }
   0x3   :  { %s26_s13 = sshll.u32 %s925_s12, 4  ;;  %p832_p0 = scmp.ne.s32.totalorder %s1010_s1, %s831_s16  ;;  %s27_s13 = int_to_ptr.vmem [resolvable:$true] %s26_s13 }
   0x4   :  { %p835_p1 = scmp.lt.u32.totalorder %s831_s16, %s1010_s1 }
   0x6   :  { %p837_p2 = pnand %p835_p1, %p832_p0 }
   0x8   :  { %840 = shalt.err (!%p837_p2)
}
   0x9   :  { %s841_s21 = scalar_lea.vmem %s27_s13, 16384  ;;  %p846_p4 = scmp.lt.s32.totalorder %s27_s13, %s27_s13 }
   0xa   :  { %p842_p3 = scmp.ne.s32.totalorder %s27_s13, %s841_s21  ;;  %p847_p5 = scmp.lt.s32.totalorder %s841_s21, %s841_s21 }
   0xc   :  { %p848_p6 = por %p847_p5, %p846_p4 }
   0xe   :  { %p849_p7 = pnand %p848_p6, %p842_p3 }
  0x10   :  { %852 = shalt.err (!%p849_p7)
}
  0x11   :  { %s926_s22 = smov 512   ;;  %s927_s23 = smov 32  }
  0x12   :  { %32 = dma.hbm_to_vmem [thread:$0]  %s1010_s1, 16384, %s27_s13, [#allocation6], %s926_s22, %s926_s22, %s927_s23  }
  0x13   :  { %s928_s26 = smov [#allocation2]   ;;  %s929_s28 = smov [#allocation7]  }
  0x14   :  { %s17_s27 = sshll.u32 %s928_s26, 4  ;;  %s38_s29 = sshll.u32 %s929_s28, 4  ;;  %s18_s27 = int_to_ptr.vmem [resolvable:$true] %s17_s27  ;;  %s39_s29 = int_to_ptr.vmem [resolvable:$true] %s38_s29 }
  0x15   :  { %s853_s5 = scalar_lea.hbm %s1009_s0, 32 }
  0x16   :  { %p854_p8 = scmp.ne.s32.totalorder %s1009_s0, %s853_s5  ;;  %p857_p9 = scmp.lt.u32.totalorder %s853_s5, %s1009_s0 }
  0x18   :  { %p859_p10 = pnand %p857_p9, %p854_p8 }
  0x1a   :  { %862 = shalt.err (!%p859_p10)
}
  0x1b   :  { %s863_s1 = scalar_lea.vmem %s18_s27, 32  ;;  %p868_p12 = scmp.lt.s32.totalorder %s18_s27, %s18_s27 }
  0x1c   :  { %p864_p11 = scmp.ne.s32.totalorder %s18_s27, %s863_s1  ;;  %p869_p13 = scmp.lt.s32.totalorder %s863_s1, %s863_s1 }
  0x1e   :  { %p870_p0 = por %p869_p13, %p868_p12 }
  0x20   :  { %p871_p1 = pnand %p870_p0, %p864_p11 }
  0x22   :  { %874 = shalt.err (!%p871_p1)
}
  0x23   :  { %20 = dma.hbm_to_vmem [thread:$0]  %s1009_s0, 32, %s18_s27, [#allocation3]  }
  0x24   :  { %s875_s14 = scalar_lea.hbm %s1011_s2, 8192 }
  0x25   :  { %p876_p2 = scmp.ne.s32.totalorder %s1011_s2, %s875_s14  ;;  %p879_p3 = scmp.lt.u32.totalorder %s875_s14, %s1011_s2 }
  0x27   :  { %p881_p4 = pnand %p879_p3, %p876_p2 }
  0x29   :  { %884 = shalt.err (!%p881_p4)
}
  0x2a   :  { %s885_s19 = scalar_lea.vmem %s39_s29, 8192  ;;  %p890_p6 = scmp.lt.s32.totalorder %s39_s29, %s39_s29 }
  0x2b   :  { %p886_p5 = scmp.ne.s32.totalorder %s39_s29, %s885_s19  ;;  %p891_p7 = scmp.lt.s32.totalorder %s885_s19, %s885_s19 }
  0x2d   :  { %p892_p8 = por %p891_p7, %p890_p6 }
  0x2f   :  { %p893_p9 = pnand %p892_p8, %p886_p5 }
  0x31   :  { %896 = shalt.err (!%p893_p9)
}
  0x32   :  { %s930_s0 = smov 128   ;;  %s931_s20 = smov 8  }
  0x33   :  { %44 = dma.hbm_to_vmem [thread:$0]  %s1011_s2, 8192, %s39_s29, [#allocation6], %s930_s0, %s930_s0, %s931_s20  }
  0x34   :  { %919 = dma.done.wait [#allocation3], 32  }
  0x35   :  { %920 = vsyncadd [#allocation3], 4294967264 }
  0x36   :  { %921 = dma.done.wait [#allocation6], 24576  }
  0x37   :  { %922 = vsyncadd [#allocation6], 4294942720  ;;  %v56_v0 = vld [vmem:[#allocation5 + $0x8] sm:$0xff]  ;;  %v58_v2 = vld [vmem:[#allocation5 + $0x18] sm:$0xff]  ;;  %s932_s2 = smov [#allocation8]  }
  0x38   :  { %v60_v1 = vld [vmem:[#allocation5 + $0x28] sm:$0xff]  ;;  %v62_v4 = vld [vmem:[#allocation5 + $0x38] sm:$0xff]  ;;  %v55_v5 = vld [vmem:[#allocation5] sm:$0xff]  ;;  %s551_s23 = sshll.u32 %s932_s2, 4  ;;  %s552_s23 = int_to_ptr.vmem [resolvable:$true] %s551_s23 }
  0x39   :  { %v631_v3 = vpack.c.bf16 %v60_v1, %v56_v0  ;;  %v59_v6 = vld [vmem:[#allocation5 + $0x20] sm:$0xff]  ;;  %v695_v7 = vpack.c.bf16 %v62_v4, %v58_v2  ;;  %v57_v9 = vld [vmem:[#allocation5 + $0x10] sm:$0xff]  ;;  %v64_v11 = vld [vmem:[#allocation5 + $0x48] sm:$0xff]  ;;  %s897_s24 = scalar_lea.vmem %s552_s23, 16  ;;  %s901_s25 = scalar_lea.vmem %s552_s23, 32 }
  0x3a   :  { %v633_v8 = vpack.c.bf16 %v59_v6, %v55_v5  ;;  %v61_v10 = vld [vmem:[#allocation5 + $0x30] sm:$0xff]  ;;  %v68_v13 = vld [vmem:[#allocation5 + $0x68] sm:$0xff]  ;;  %v66_v14 = vld [vmem:[#allocation5 + $0x58] sm:$0xff]  ;;  %p898_p10 = scmp.ne.s32.totalorder %s552_s23, %s897_s24  ;;  %p902_p11 = scmp.lt.s32.totalorder %s552_s23, %s552_s23 }
  0x3b   :  { %632 = vmatprep.subr.bf16.mxu0 %v631_v3  ;;  %v697_v12 = vpack.c.bf16 %v61_v10, %v57_v9  ;;  %v70_v15 = vld [vmem:[#allocation5 + $0x78] sm:$0xff]  ;;  %696 = vmatprep.subr.bf16.mxu1 %v695_v7  ;;  %v635_v16 = vpack.c.bf16 %v68_v13, %v64_v11  ;;  %v63_v18 = vld [vmem:[#allocation5 + $0x40] sm:$0xff]  ;;  %v65_v20 = vld [vmem:[#allocation5 + $0x50] sm:$0xff]  ;;  %p903_p12 = scmp.lt.s32.totalorder %s901_s25, %s897_s24 }
  0x3c   :  { %634 = vmatpush1.bf16.msra.mxu0 %v633_v8  ;;  %v699_v17 = vpack.c.bf16 %v70_v15, %v66_v14  ;;  %v67_v19 = vld [vmem:[#allocation5 + $0x60] sm:$0xff]  ;;  %v69_v22 = vld [vmem:[#allocation5 + $0x70] sm:$0xff]  ;;  %v72_v23 = vld [vmem:[#allocation5 + $0x88] sm:$0xff] }
  0x3d   :  { %698 = vmatpush1.bf16.msra.mxu1 %v697_v12  ;;  %v637_v21 = vpack.c.bf16 %v67_v19, %v63_v18  ;;  %v76_v24 = vld [vmem:[#allocation5 + $0xa8] sm:$0xff]  ;;  %636 = vmatprep.subr.bf16.mxu0 %v635_v16  ;;  %v701_v25 = vpack.c.bf16 %v69_v22, %v65_v20  ;;  %v74_v27 = vld [vmem:[#allocation5 + $0x98] sm:$0xff]  ;;  %v71_v29 = vld [vmem:[#allocation5 + $0x80] sm:$0xff]  ;;  %p904_p13 = por %p903_p12, %p902_p11 }
  0x3e   :  { %700 = vmatprep.subr.bf16.mxu1 %v699_v17  ;;  %v639_v26 = vpack.c.bf16 %v76_v24, %v72_v23  ;;  %v78_v28 = vld [vmem:[#allocation5 + $0xb8] sm:$0xff]  ;;  %v75_v31 = vld [vmem:[#allocation5 + $0xa0] sm:$0xff]  ;;  %v73_v32 = vld [vmem:[#allocation5 + $0x90] sm:$0xff] }
  0x3f   :  { %v703_v30 = vpack.c.bf16 %v78_v28, %v74_v27  ;;  %v77_v33 = vld [vmem:[#allocation5 + $0xb0] sm:$0xff]  ;;  %v641_v34 = vpack.c.bf16 %v75_v31, %v71_v29  ;;  %v80_v35 = vld [vmem:[#allocation5 + $0xc8] sm:$0xff]  ;;  %v82_v37 = vld [vmem:[#allocation5 + $0xd8] sm:$0xff]  ;;  %p905_p0 = pnand %p904_p13, %p898_p10 }
  0x40   :  { %638 = vmatpush1.bf16.msra.mxu0 %v637_v21  ;;  %v84_v36 = vld [vmem:[#allocation5 + $0xe8] sm:$0xff]  ;;  %v705_v38 = vpack.c.bf16 %v77_v33, %v73_v32  ;;  %v86_v40 = vld [vmem:[#allocation5 + $0xf8] sm:$0xff]  ;;  %v79_v41 = vld [vmem:[#allocation5 + $0xc0] sm:$0xff] }
  0x41   :  { %702 = vmatpush1.bf16.msra.mxu1 %v701_v25  ;;  %640 = vmatprep.subr.bf16.mxu0 %v639_v26  ;;  %v643_v39 = vpack.c.bf16 %v84_v36, %v80_v35  ;;  %v83_v42 = vld [vmem:[#allocation5 + $0xe0] sm:$0xff]  ;;  %v707_v43 = vpack.c.bf16 %v86_v40, %v82_v37  ;;  %v81_v44 = vld [vmem:[#allocation5 + $0xd0] sm:$0xff]  ;;  %v88_v46 = vld [vmem:[#allocation5 + $0x108] sm:$0xff] }
  0x42   :  { %704 = vmatprep.subr.bf16.mxu1 %v703_v30  ;;  %v85_v45 = vld [vmem:[#allocation5 + $0xf0] sm:$0xff]  ;;  %v92_v47 = vld [vmem:[#allocation5 + $0x128] sm:$0xff]  ;;  %v90_v48 = vld [vmem:[#allocation5 + $0x118] sm:$0xff]  ;;  %v645_v50 = vpack.c.bf16 %v83_v42, %v79_v41 }
  0x43   :  { %v94_v49 = vld [vmem:[#allocation5 + $0x138] sm:$0xff]  ;;  %v709_v51 = vpack.c.bf16 %v85_v45, %v81_v44  ;;  %v647_v52 = vpack.c.bf16 %v92_v47, %v88_v46  ;;  %v87_v53 = vld [vmem:[#allocation5 + $0x100] sm:$0xff]  ;;  %v89_v55 = vld [vmem:[#allocation5 + $0x110] sm:$0xff]  ;;  %v248_v46 = vlaneseq }
  0x44   :  { %642 = vmatpush1.bf16.msra.mxu0 %v641_v34  ;;  %v91_v54 = vld [vmem:[#allocation5 + $0x120] sm:$0xff]  ;;  %v711_v56 = vpack.c.bf16 %v94_v49, %v90_v48  ;;  %v93_v57 = vld [vmem:[#allocation5 + $0x130] sm:$0xff]  ;;  %v96_v58 = vld [vmem:[#allocation5 + $0x148] sm:$0xff] }
  0x45   :  { %706 = vmatpush1.bf16.msra.mxu1 %v705_v38  ;;  %644 = vmatprep.subr.bf16.mxu0 %v643_v39  ;;  %v100_v59 = vld [vmem:[#allocation5 + $0x168] sm:$0xff]  ;;  %v98_v60 = vld [vmem:[#allocation5 + $0x158] sm:$0xff]  ;;  %v649_v62 = vpack.c.bf16 %v91_v54, %v87_v53  ;;  %v713_v63 = vpack.c.bf16 %v93_v57, %v89_v55  ;;  %v95_v1 = vld [vmem:[#allocation5 + $0x140] sm:$0xff] }
  0x46   :  { %708 = vmatprep.subr.bf16.mxu1 %v707_v43  ;;  %v102_v61 = vld [vmem:[#allocation5 + $0x178] sm:$0xff]  ;;  %v651_v0 = vpack.c.bf16 %v100_v59, %v96_v58  ;;  %v99_v2 = vld [vmem:[#allocation5 + $0x160] sm:$0xff]  ;;  %v97_v3 = vld [vmem:[#allocation5 + $0x150] sm:$0xff]  ;;  %v989_v59 = vshrl.u32 %v248_v46, 7 }
  0x47   :  { %v715_v4 = vpack.c.bf16 %v102_v61, %v98_v60  ;;  %v101_v5 = vld [vmem:[#allocation5 + $0x170] sm:$0xff]  ;;  %v104_v6 = vld [vmem:[#allocation5 + $0x188] sm:$0xff]  ;;  %v106_v8 = vld [vmem:[#allocation5 + $0x198] sm:$0xff]  ;;  %v653_v10 = vpack.c.bf16 %v99_v2, %v95_v1 }
  0x48   :  { %646 = vmatpush1.bf16.msra.mxu0 %v645_v50  ;;  %v108_v7 = vld [vmem:[#allocation5 + $0x1a8] sm:$0xff]  ;;  %v110_v9 = vld [vmem:[#allocation5 + $0x1b8] sm:$0xff]  ;;  %v717_v11 = vpack.c.bf16 %v101_v5, %v97_v3  ;;  %v103_v13 = vld [vmem:[#allocation5 + $0x180] sm:$0xff] }
  0x49   :  { %710 = vmatpush1.bf16.msra.mxu1 %v709_v51  ;;  %648 = vmatprep.subr.bf16.mxu0 %v647_v52  ;;  %v655_v12 = vpack.c.bf16 %v108_v7, %v104_v6  ;;  %v107_v14 = vld [vmem:[#allocation5 + $0x1a0] sm:$0xff]  ;;  %v105_v15 = vld [vmem:[#allocation5 + $0x190] sm:$0xff]  ;;  %v719_v16 = vpack.c.bf16 %v110_v9, %v106_v8  ;;  %v112_v18 = vld [vmem:[#allocation5 + $0x1c8] sm:$0xff]  ;;  %v254_v8 = vsub.s32 1, %v989_v59 }
  0x4a   :  { %712 = vmatprep.subr.bf16.mxu1 %v711_v56  ;;  %v109_v17 = vld [vmem:[#allocation5 + $0x1b0] sm:$0xff]  ;;  %v116_v19 = vld [vmem:[#allocation5 + $0x1e8] sm:$0xff]  ;;  %v114_v20 = vld [vmem:[#allocation5 + $0x1d8] sm:$0xff]  ;;  %v657_v22 = vpack.c.bf16 %v107_v14, %v103_v13 }
  0x4b   :  { %v118_v21 = vld [vmem:[#allocation5 + $0x1f8] sm:$0xff]  ;;  %v721_v23 = vpack.c.bf16 %v109_v17, %v105_v15  ;;  %v659_v24 = vpack.c.bf16 %v116_v19, %v112_v18  ;;  %v111_v25 = vld [vmem:[#allocation5 + $0x1c0] sm:$0xff]  ;;  %v113_v27 = vld [vmem:[#allocation5 + $0x1d0] sm:$0xff] }
  0x4c   :  { %650 = vmatpush1.bf16.msra.mxu0 %v649_v62  ;;  %v115_v26 = vld [vmem:[#allocation5 + $0x1e0] sm:$0xff]  ;;  %v723_v28 = vpack.c.bf16 %v118_v21, %v114_v20  ;;  %v117_v29 = vld [vmem:[#allocation5 + $0x1f0] sm:$0xff]  ;;  %v120_v30 = vld [vmem:[#allocation5 + $0x208] sm:$0xff] }
  0x4d   :  { %714 = vmatpush1.bf16.msra.mxu1 %v713_v63  ;;  %652 = vmatprep.subr.bf16.mxu0 %v651_v0  ;;  %v124_v31 = vld [vmem:[#allocation5 + $0x228] sm:$0xff]  ;;  %v122_v32 = vld [vmem:[#allocation5 + $0x218] sm:$0xff]  ;;  %v661_v34 = vpack.c.bf16 %v115_v26, %v111_v25  ;;  %v725_v35 = vpack.c.bf16 %v117_v29, %v113_v27  ;;  %v119_v37 = vld [vmem:[#allocation5 + $0x200] sm:$0xff] }
  0x4e   :  { %716 = vmatprep.subr.bf16.mxu1 %v715_v4  ;;  %v126_v33 = vld [vmem:[#allocation5 + $0x238] sm:$0xff]  ;;  %v663_v36 = vpack.c.bf16 %v124_v31, %v120_v30  ;;  %v123_v38 = vld [vmem:[#allocation5 + $0x220] sm:$0xff]  ;;  %v121_v39 = vld [vmem:[#allocation5 + $0x210] sm:$0xff] }
  0x4f   :  { %v727_v40 = vpack.c.bf16 %v126_v33, %v122_v32  ;;  %v125_v41 = vld [vmem:[#allocation5 + $0x230] sm:$0xff]  ;;  %v128_v42 = vld [vmem:[#allocation5 + $0x248] sm:$0xff]  ;;  %v130_v44 = vld [vmem:[#allocation5 + $0x258] sm:$0xff]  ;;  %v665_v47 = vpack.c.bf16 %v123_v38, %v119_v37 }
  0x50   :  { %654 = vmatpush1.bf16.msra.mxu0 %v653_v10  ;;  %v132_v43 = vld [vmem:[#allocation5 + $0x268] sm:$0xff]  ;;  %v134_v45 = vld [vmem:[#allocation5 + $0x278] sm:$0xff]  ;;  %v729_v48 = vpack.c.bf16 %v125_v41, %v121_v39  ;;  %v127_v50 = vld [vmem:[#allocation5 + $0x240] sm:$0xff] }
  0x51   :  { %718 = vmatpush1.bf16.msra.mxu1 %v717_v11  ;;  %656 = vmatprep.subr.bf16.mxu0 %v655_v12  ;;  %v667_v49 = vpack.c.bf16 %v132_v43, %v128_v42  ;;  %v131_v51 = vld [vmem:[#allocation5 + $0x260] sm:$0xff]  ;;  %v129_v52 = vld [vmem:[#allocation5 + $0x250] sm:$0xff]  ;;  %v731_v53 = vpack.c.bf16 %v134_v45, %v130_v44  ;;  %v136_v55 = vld [vmem:[#allocation5 + $0x288] sm:$0xff] }
  0x52   :  { %720 = vmatprep.subr.bf16.mxu1 %v719_v16  ;;  %v133_v54 = vld [vmem:[#allocation5 + $0x270] sm:$0xff]  ;;  %v140_v56 = vld [vmem:[#allocation5 + $0x2a8] sm:$0xff]  ;;  %v138_v57 = vld [vmem:[#allocation5 + $0x298] sm:$0xff]  ;;  %v669_v60 = vpack.c.bf16 %v131_v51, %v127_v50 }
  0x53   :  { %v142_v58 = vld [vmem:[#allocation5 + $0x2b8] sm:$0xff]  ;;  %v733_v61 = vpack.c.bf16 %v133_v54, %v129_v52  ;;  %v671_v62 = vpack.c.bf16 %v140_v56, %v136_v55  ;;  %v135_v63 = vld [vmem:[#allocation5 + $0x280] sm:$0xff]  ;;  %v137_v1 = vld [vmem:[#allocation5 + $0x290] sm:$0xff] }
  0x54   :  { %658 = vmatpush1.bf16.msra.mxu0 %v657_v22  ;;  %v139_v0 = vld [vmem:[#allocation5 + $0x2a0] sm:$0xff]  ;;  %v735_v2 = vpack.c.bf16 %v142_v58, %v138_v57  ;;  %v141_v3 = vld [vmem:[#allocation5 + $0x2b0] sm:$0xff]  ;;  %v144_v4 = vld [vmem:[#allocation5 + $0x2c8] sm:$0xff] }
  0x55   :  { %722 = vmatpush1.bf16.msra.mxu1 %v721_v23  ;;  %660 = vmatprep.subr.bf16.mxu0 %v659_v24  ;;  %v148_v5 = vld [vmem:[#allocation5 + $0x2e8] sm:$0xff]  ;;  %v146_v6 = vld [vmem:[#allocation5 + $0x2d8] sm:$0xff]  ;;  %v673_v9 = vpack.c.bf16 %v139_v0, %v135_v63  ;;  %v143_v10 = vld [vmem:[#allocation5 + $0x2c0] sm:$0xff]  ;;  %v737_v11 = vpack.c.bf16 %v141_v3, %v137_v1 }
  0x56   :  { %724 = vmatprep.subr.bf16.mxu1 %v723_v28  ;;  %v150_v7 = vld [vmem:[#allocation5 + $0x2f8] sm:$0xff]  ;;  %v675_v12 = vpack.c.bf16 %v148_v5, %v144_v4  ;;  %v147_v13 = vld [vmem:[#allocation5 + $0x2e0] sm:$0xff]  ;;  %v145_v14 = vld [vmem:[#allocation5 + $0x2d0] sm:$0xff] }
  0x57   :  { %v149_v15 = vld [vmem:[#allocation5 + $0x2f0] sm:$0xff]  ;;  %v739_v16 = vpack.c.bf16 %v150_v7, %v146_v6  ;;  %v152_v17 = vld [vmem:[#allocation5 + $0x308] sm:$0xff]  ;;  %v992_v19 = vld [vmem:[#allocation2] sm:$0x3]  ;;  %v677_v23 = vpack.c.bf16 %v147_v13, %v143_v10  ;;  %v250_v6 = vsub.s32 0, %v989_v59 }
  0x58   :  { %662 = vmatpush1.bf16.msra.mxu0 %v661_v34  ;;  %v156_v18 = vld [vmem:[#allocation5 + $0x328] sm:$0xff]  ;;  %v154_v20 = vld [vmem:[#allocation5 + $0x318] sm:$0xff]  ;;  %v255_v22 = vrot.slane %v992_v19, %v254_v8  ;;  %v741_v24 = vpack.c.bf16 %v149_v15, %v145_v14  ;;  %v151_v26 = vld [vmem:[#allocation5 + $0x300] sm:$0xff] }
  0x59   :  { %726 = vmatpush1.bf16.msra.mxu1 %v725_v35  ;;  %664 = vmatprep.subr.bf16.mxu0 %v663_v36  ;;  %v158_v21 = vld [vmem:[#allocation5 + $0x338] sm:$0xff]  ;;  %v679_v25 = vpack.c.bf16 %v156_v18, %v152_v17  ;;  %v155_v27 = vld [vmem:[#allocation5 + $0x320] sm:$0xff]  ;;  %v153_v28 = vld [vmem:[#allocation5 + $0x310] sm:$0xff] }
  0x5a   :  { %728 = vmatprep.subr.bf16.mxu1 %v727_v40  ;;  %v743_v29 = vpack.c.bf16 %v158_v21, %v154_v20  ;;  %v157_v30 = vld [vmem:[#allocation5 + $0x330] sm:$0xff]  ;;  %v160_v31 = vld [vmem:[#allocation5 + $0x348] sm:$0xff]  ;;  %322 = vmatprep.mubr.f32.mxu0 %v255_v22  ;;  %v162_v33 = vld [vmem:[#allocation5 + $0x358] sm:$0xff]  ;;  %v681_v35 = vpack.c.bf16 %v155_v27, %v151_v26  ;;  %v251_v20 = vrot.slane %v992_v19, %v250_v6 }
  0x5b   :  { %v164_v32 = vld [vmem:[#allocation5 + $0x368] sm:$0xff]  ;;  %v166_v34 = vld [vmem:[#allocation5 + $0x378] sm:$0xff]  ;;  %393 = vmatprep.mubr.f32.mxu1 %v255_v22  ;;  %v745_v36 = vpack.c.bf16 %v157_v30, %v153_v28  ;;  %v159_v38 = vld [vmem:[#allocation5 + $0x340] sm:$0xff] }
  0x5c   :  { %666 = vmatpush1.bf16.msra.mxu0 %v665_v47  ;;  %v683_v37 = vpack.c.bf16 %v164_v32, %v160_v31  ;;  %v163_v39 = vld [vmem:[#allocation5 + $0x360] sm:$0xff]  ;;  %v161_v40 = vld [vmem:[#allocation5 + $0x350] sm:$0xff]  ;;  %v747_v41 = vpack.c.bf16 %v166_v34, %v162_v33  ;;  %v168_v43 = vld [vmem:[#allocation5 + $0x388] sm:$0xff] }
  0x5d   :  { %730 = vmatpush1.bf16.msra.mxu1 %v729_v48  ;;  %668 = vmatprep.subr.bf16.mxu0 %v667_v49  ;;  %v165_v42 = vld [vmem:[#allocation5 + $0x370] sm:$0xff]  ;;  %v172_v44 = vld [vmem:[#allocation5 + $0x3a8] sm:$0xff]  ;;  %v170_v45 = vld [vmem:[#allocation5 + $0x398] sm:$0xff]  ;;  %v685_v47 = vpack.c.bf16 %v163_v39, %v159_v38 }
  0x5e   :  { %732 = vmatprep.subr.bf16.mxu1 %v731_v53  ;;  %v174_v46 = vld [vmem:[#allocation5 + $0x3b8] sm:$0xff]  ;;  %v749_v48 = vpack.c.bf16 %v165_v42, %v161_v40  ;;  %v687_v49 = vpack.c.bf16 %v172_v44, %v168_v43  ;;  %v167_v50 = vld [vmem:[#allocation5 + $0x380] sm:$0xff]  ;;  %v169_v52 = vld [vmem:[#allocation5 + $0x390] sm:$0xff] }
  0x5f   :  { %v171_v51 = vld [vmem:[#allocation5 + $0x3a0] sm:$0xff]  ;;  %v751_v53 = vpack.c.bf16 %v174_v46, %v170_v45  ;;  %v173_v54 = vld [vmem:[#allocation5 + $0x3b0] sm:$0xff]  ;;  %v176_v55 = vld [vmem:[#allocation5 + $0x3c8] sm:$0xff] }
  0x60   :  { %670 = vmatpush1.bf16.msra.mxu0 %v669_v60  ;;  %v180_v56 = vld [vmem:[#allocation5 + $0x3e8] sm:$0xff]  ;;  %v178_v57 = vld [vmem:[#allocation5 + $0x3d8] sm:$0xff]  ;;  %v689_v60 = vpack.c.bf16 %v171_v51, %v167_v50  ;;  %v175_v63 = vld [vmem:[#allocation5 + $0x3c0] sm:$0xff] }
  0x61   :  { %734 = vmatpush1.bf16.msra.mxu1 %v733_v61  ;;  %672 = vmatprep.subr.bf16.mxu0 %v671_v62  ;;  %v182_v58 = vld [vmem:[#allocation5 + $0x3f8] sm:$0xff]  ;;  %v753_v61 = vpack.c.bf16 %v173_v54, %v169_v52  ;;  %v691_v62 = vpack.c.bf16 %v180_v56, %v176_v55  ;;  %v179_v0 = vld [vmem:[#allocation5 + $0x3e0] sm:$0xff]  ;;  %v177_v1 = vld [vmem:[#allocation5 + $0x3d0] sm:$0xff] }
  0x62   :  { %736 = vmatprep.subr.bf16.mxu1 %v735_v2  ;;  %v755_v2 = vpack.c.bf16 %v182_v58, %v178_v57  ;;  %v181_v3 = vld [vmem:[#allocation5 + $0x3f0] sm:$0xff]  ;;  %v199_v4 = vld [vmem:[#allocation7 + $0x80] sm:$0xff]  ;;  %v200_v5 = vld [vmem:[#allocation7 + $0x88] sm:$0xff] }
  0x63   :  { %v231_v7 = vld [vmem:[#allocation7 + $0x180] sm:$0xff]  ;;  %v232_v8 = vld [vmem:[#allocation7 + $0x188] sm:$0xff]  ;;  %v757_v10 = vpack.c.bf16 %v181_v3, %v177_v1  ;;  %v201_v17 = vld [vmem:[#allocation7 + $0x90] sm:$0xff] }
  0x64   :  { %674 = vmatpush1.bf16.msra.mxu0 %v673_v9  ;;  %v693_v9 = vpack.c.bf16 %v179_v0, %v175_v63  ;;  %v184_v13 = vld [vmem:[#allocation7 + $0x8] sm:$0xff]  ;;  %v215_v14 = vld [vmem:[#allocation7 + $0x100] sm:$0xff]  ;;  %v791_v15 = vpack.c.bf16 %v232_v8, %v231_v7  ;;  %v202_v18 = vld [vmem:[#allocation7 + $0x98] sm:$0xff] }
  0x65   :  { %738 = vmatpush1.bf16.msra.mxu1 %v737_v11  ;;  %676 = vmatprep.subr.bf16.mxu0 %v675_v12  ;;  %v759_v11 = vpack.c.bf16 %v200_v5, %v199_v4  ;;  %v183_v12 = vld [vmem:[#allocation7] sm:$0xff]  ;;  %v233_v21 = vld [vmem:[#allocation7 + $0x190] sm:$0xff]  ;;  %v234_v59 = vld [vmem:[#allocation7 + $0x198] sm:$0xff] }
  0x66   :  { %740 = vmatprep.subr.bf16.mxu1 %v739_v16  ;;  %v216_v16 = vld [vmem:[#allocation7 + $0x108] sm:$0xff]  ;;  %v761_v22 = vpack.c.bf16 %v184_v13, %v183_v12  ;;  %v186_v26 = vld [vmem:[#allocation7 + $0x18] sm:$0xff]  ;;  %v217_v27 = vld [vmem:[#allocation7 + $0x110] sm:$0xff]  ;;  %v795_v28 = vpack.c.bf16 %v234_v59, %v233_v21 }
  0x67   :  { %v203_v30 = vld [vmem:[#allocation7 + $0xa0] sm:$0xff]  ;;  %v204_v31 = vld [vmem:[#allocation7 + $0xa8] sm:$0xff]  ;;  %v206_v42 = vld [vmem:[#allocation7 + $0xb8] sm:$0xff] }
  0x68   :  { %678 = vmatpush1.bf16.msra.mxu0 %v677_v23  ;;  %v793_v23 = vpack.c.bf16 %v216_v16, %v215_v14  ;;  %v235_v32 = vld [vmem:[#allocation7 + $0x1a0] sm:$0xff]  ;;  %v236_v33 = vld [vmem:[#allocation7 + $0x1a8] sm:$0xff]  ;;  %v237_v43 = vld [vmem:[#allocation7 + $0x1b0] sm:$0xff] }
  0x69   :  { %742 = vmatpush1.bf16.msra.mxu1 %v741_v24  ;;  %680 = vmatprep.subr.bf16.mxu0 %v679_v25  ;;  %v763_v24 = vpack.c.bf16 %v202_v18, %v201_v17  ;;  %v185_v25 = vld [vmem:[#allocation7 + $0x10] sm:$0xff]  ;;  %v219_v38 = vld [vmem:[#allocation7 + $0x120] sm:$0xff]  ;;  %v799_v39 = vpack.c.bf16 %v236_v33, %v235_v32  ;;  %v220_v40 = vld [vmem:[#allocation7 + $0x128] sm:$0xff] }
  0x6a   :  { %744 = vmatprep.subr.bf16.mxu1 %v743_v29  ;;  %v218_v29 = vld [vmem:[#allocation7 + $0x118] sm:$0xff]  ;;  %v765_v19 = vpack.c.bf16 %v186_v26, %v185_v25  ;;  %v801_v46 = vpack.c.bf16 %v220_v40, %v219_v38  ;;  %v221_v50 = vld [vmem:[#allocation7 + $0x130] sm:$0xff]  ;;  %v208_v54 = vld [vmem:[#allocation7 + $0xc8] sm:$0xff] }
  0x6b   :  { %v797_v34 = vpack.c.bf16 %v218_v29, %v217_v27  ;;  %v238_v44 = vld [vmem:[#allocation7 + $0x1b8] sm:$0xff]  ;;  %v239_v55 = vld [vmem:[#allocation7 + $0x1c0] sm:$0xff]  ;;  %v240_v56 = vld [vmem:[#allocation7 + $0x1c8] sm:$0xff] }
  0x6c   :  { %682 = vmatpush1.bf16.msra.mxu0 %v681_v35  ;;  %v767_v35 = vpack.c.bf16 %v204_v31, %v203_v30  ;;  %v803_v51 = vpack.c.bf16 %v238_v44, %v237_v43  ;;  %v222_v52 = vld [vmem:[#allocation7 + $0x138] sm:$0xff]  ;;  %v223_v63 = vld [vmem:[#allocation7 + $0x140] sm:$0xff]  ;;  %v807_v0 = vpack.c.bf16 %v240_v56, %v239_v55  ;;  %v224_v1 = vld [vmem:[#allocation7 + $0x148] sm:$0xff] }
  0x6d   :  { %746 = vmatpush1.bf16.msra.mxu1 %v745_v36  ;;  %684 = vmatprep.subr.bf16.mxu0 %v683_v37  ;;  %v187_v36 = vld [vmem:[#allocation7 + $0x20] sm:$0xff]  ;;  %v188_v37 = vld [vmem:[#allocation7 + $0x28] sm:$0xff]  ;;  %v805_v58 = vpack.c.bf16 %v222_v52, %v221_v50  ;;  %v210_v3 = vld [vmem:[#allocation7 + $0xd8] sm:$0xff]  ;;  %v809_v7 = vpack.c.bf16 %v224_v1, %v223_v63 }
  0x6e   :  { %748 = vmatprep.subr.bf16.mxu1 %v747_v41  ;;  %v205_v41 = vld [vmem:[#allocation7 + $0xb0] sm:$0xff]  ;;  %v769_v45 = vpack.c.bf16 %v188_v37, %v187_v36  ;;  %v242_v5 = vld [vmem:[#allocation7 + $0x1d8] sm:$0xff]  ;;  %v211_v14 = vld [vmem:[#allocation7 + $0xe0] sm:$0xff] }
  0x6f   :  { %v241_v4 = vld [vmem:[#allocation7 + $0x1d0] sm:$0xff]  ;;  %v226_v13 = vld [vmem:[#allocation7 + $0x158] sm:$0xff]  ;;  %v243_v16 = vld [vmem:[#allocation7 + $0x1e0] sm:$0xff] }
  0x70   :  { %686 = vmatpush1.bf16.msra.mxu0 %v685_v47  ;;  %v771_v47 = vpack.c.bf16 %v206_v42, %v205_v41  ;;  %v811_v12 = vpack.c.bf16 %v242_v5, %v241_v4  ;;  %v244_v17 = vld [vmem:[#allocation7 + $0x1e8] sm:$0xff]  ;;  %v195_v59 = vld [vmem:[#allocation7 + $0x60] sm:$0xff]  ;;  %v214_v29 = vld [vmem:[#allocation7 + $0xf8] sm:$0xff] }
  0x71   :  { %750 = vmatpush1.bf16.msra.mxu1 %v749_v48  ;;  %688 = vmatprep.subr.bf16.mxu0 %v687_v49  ;;  %v189_v48 = vld [vmem:[#allocation7 + $0x30] sm:$0xff]  ;;  %v190_v49 = vld [vmem:[#allocation7 + $0x38] sm:$0xff]  ;;  %v228_v25 = vld [vmem:[#allocation7 + $0x168] sm:$0xff] }
  0x72   :  { %752 = vmatprep.subr.bf16.mxu1 %v751_v53  ;;  %v207_v53 = vld [vmem:[#allocation7 + $0xc0] sm:$0xff]  ;;  %v773_v57 = vpack.c.bf16 %v190_v49, %v189_v48  ;;  %v245_v30 = vld [vmem:[#allocation7 + $0x1f0] sm:$0xff]  ;;  %v246_v32 = vld [vmem:[#allocation7 + $0x1f8] sm:$0xff] }
  0x73   :  { %v197_v33 = vld [vmem:[#allocation7 + $0x70] sm:$0xff]  ;;  %v230_v37 = vld [vmem:[#allocation7 + $0x178] sm:$0xff] }
  0x74   :  { %690 = vmatpush1.bf16.msra.mxu0 %v689_v60  ;;  %v775_v60 = vpack.c.bf16 %v208_v54, %v207_v53  ;;  %v229_v36 = vld [vmem:[#allocation7 + $0x170] sm:$0xff] }
  0x75   :  { %754 = vmatpush1.bf16.msra.mxu1 %v753_v61  ;;  %692 = vmatprep.subr.bf16.mxu0 %v691_v62  ;;  %v191_v61 = vld [vmem:[#allocation7 + $0x40] sm:$0xff]  ;;  %v192_v62 = vld [vmem:[#allocation7 + $0x48] sm:$0xff]  ;;  %v821_v38 = vpack.c.bf16 %v230_v37, %v229_v36 }
  0x76   :  { %756 = vmatprep.subr.bf16.mxu1 %v755_v2  ;;  %v209_v2 = vld [vmem:[#allocation7 + $0xd0] sm:$0xff]  ;;  %v777_v6 = vpack.c.bf16 %v192_v62, %v191_v61 }
  0x77   :  { %v779_v8 = vpack.c.bf16 %v210_v3, %v209_v2 }
  0x78   :  { %694 = vmatpush1.bf16.msra.mxu0 %v693_v9  ;;  %v193_v9 = vld [vmem:[#allocation7 + $0x50] sm:$0xff] }
  0x79   :  { %758 = vmatpush1.bf16.msra.mxu1 %v757_v10  ;;  %760 = vmatprep.subr.bf16.mxu0 %v759_v11  ;;  %v194_v10 = vld [vmem:[#allocation7 + $0x58] sm:$0xff]  ;;  %v225_v11 = vld [vmem:[#allocation7 + $0x150] sm:$0xff] }
  0x7a   :  { %792 = vmatprep.subr.bf16.mxu1 %v791_v15  ;;  %v212_v15 = vld [vmem:[#allocation7 + $0xe8] sm:$0xff]  ;;  %v781_v18 = vpack.c.bf16 %v194_v10, %v193_v9 }
  0x7b   :  { %323 = vmatmul.mubr.f32.vlgmr.msra.gmra.mrb[0].mxu0 %v251_v20  ;;  %v783_v21 = vpack.c.bf16 %v212_v15, %v211_v14 }
  0x7c   :  { %394 = vmatmul.mubr.f32.vlgmr.msra.gmra.mrb[0].mxu1 %v251_v20  ;;  %762 = vmatpush3.bf16.msra.mxu0 %v761_v22  ;;  %v813_v20 = vpack.c.bf16 %v226_v13, %v225_v11  ;;  %v196_v22 = vld [vmem:[#allocation7 + $0x68] sm:$0xff] }
  0x7d   :  { %794 = vmatpush3.bf16.msra.mxu1 %v793_v23  ;;  %764 = vmatprep.subr.bf16.mxu0 %v763_v24  ;;  %v815_v23 = vpack.c.bf16 %v244_v17, %v243_v16  ;;  %v227_v24 = vld [vmem:[#allocation7 + $0x160] sm:$0xff]  ;;  %v785_v26 = vpack.c.bf16 %v196_v22, %v195_v59 }
  0x7e   :  { %796 = vmatprep.subr.bf16.mxu1 %v795_v28  ;;  %v817_v27 = vpack.c.bf16 %v228_v25, %v227_v24  ;;  %v213_v28 = vld [vmem:[#allocation7 + $0xf0] sm:$0xff] }
  0x7f   :  { %v787_v31 = vpack.c.bf16 %v214_v29, %v213_v28 }
  0x80   :  { %766 = vmatpush3.bf16.msra.mxu0 %v765_v19  ;;  %v198_v19 = vld [vmem:[#allocation7 + $0x78] sm:$0xff] }
  0x81   :  { %798 = vmatpush3.bf16.msra.mxu1 %v797_v34  ;;  %768 = vmatprep.subr.bf16.mxu0 %v767_v35  ;;  %v819_v34 = vpack.c.bf16 %v246_v32, %v245_v30  ;;  %v789_v35 = vpack.c.bf16 %v198_v19, %v197_v33 }
  0x82   :  { %800 = vmatprep.subr.bf16.mxu1 %v799_v39 }
  0x84   :  { %770 = vmatpush3.bf16.msra.mxu0 %v769_v45 }
  0x85   :  { %802 = vmatpush3.bf16.msra.mxu1 %v801_v46  ;;  %772 = vmatprep.subr.bf16.mxu0 %v771_v47 }
  0x86   :  { %804 = vmatprep.subr.bf16.mxu1 %v803_v51 }
  0x88   :  { %774 = vmatpush3.bf16.msra.mxu0 %v773_v57 }
  0x89   :  { %806 = vmatpush3.bf16.msra.mxu1 %v805_v58  ;;  %776 = vmatprep.subr.bf16.mxu0 %v775_v60 }
  0x8a   :  { %808 = vmatprep.subr.bf16.mxu1 %v807_v0 }
  0x8c   :  { %778 = vmatpush3.bf16.msra.mxu0 %v777_v6 }
  0x8d   :  { %810 = vmatpush3.bf16.msra.mxu1 %v809_v7  ;;  %780 = vmatprep.subr.bf16.mxu0 %v779_v8 }
  0x8e   :  { %812 = vmatprep.subr.bf16.mxu1 %v811_v12 }
  0x90   :  { %782 = vmatpush3.bf16.msra.mxu0 %v781_v18 }
  0x91   :  { %814 = vmatpush3.bf16.msra.mxu1 %v813_v20  ;;  %784 = vmatprep.subr.bf16.mxu0 %v783_v21 }
  0x92   :  { %816 = vmatprep.subr.bf16.mxu1 %v815_v23 }
  0x94   :  { %786 = vmatpush3.bf16.msra.mxu0 %v785_v26 }
  0x95   :  { %818 = vmatpush3.bf16.msra.mxu1 %v817_v27  ;;  %788 = vmatprep.subr.bf16.mxu0 %v787_v31 }
  0x96   :  { %820 = vmatprep.subr.bf16.mxu1 %v819_v34 }
  0x98   :  { %790 = vmatpush3.bf16.msra.mxu0 %v789_v35 }
  0x99   :  { %822 = vmatpush3.bf16.msra.mxu1 %v821_v38 }
 0x14e   :  { %v324_v39 = vpop.f32.mrb[0].mxu0 }
 0x14f   :  { %v395_v40 = vpop.f32.mrb[0].mxu1  ;;  %v326_v41 = vpop.f32.mrb[1].mxu0  ;;  %v400_v44 = vmax.f32 %v324_v39, 0.0 }
 0x150   :  { %v401_v42 = vmax.f32 %v326_v41, 0.0  ;;  %v397_v43 = vpop.f32.mrb[1].mxu1  ;;  %v402_v46 = vmax.f32 %v395_v40, 0.0 }
 0x151   :  { %v403_v45 = vmax.f32 %v397_v43, 0.0 }
 0x152   :  { %468 = vmatprep.mubr.f32.mxu0 %v401_v42 }
 0x153   :  { %538 = vmatprep.mubr.f32.mxu1 %v403_v45  ;;  %469 = vmatmul.mubr.f32.vlgmr.msra.gmra.mrb[2].mxu0 %v400_v44 }
 0x154   :  { %539 = vmatmul.mubr.f32.vlgmr.msra.gmra.mrb[2].mxu1 %v402_v46 }
 0x226   :  { %v593_v47 = vpop.f32.mrb[2].mxu0 }
 0x227   :  { %v628_v48 = vpop.f32.mrb[2].mxu1  ;;  %v594_v49 = vpop.f32.mrb[3].mxu0 }
 0x228   :  { %v595_v50 = vadd.f32 %v594_v49, %v593_v47  ;;  %v629_v51 = vpop.f32.mrb[3].mxu1 }
 0x229   :  { %v630_v52 = vadd.f32 %v629_v51, %v628_v48 }
 0x22b   :  { %v541_v53 = vadd.f32 %v630_v52, %v595_v50 }
 0x22d   :  { %544 = vst [vmem:[#allocation8] sm:$0x1] %v541_v53 }
 0x22e   :  { %908 = shalt.err (!%p905_p0)
}
 0x22f   :  { %s909_s28 = scalar_lea.hbm %s1012_s3, 16 }
 0x230   :  { %p910_p1 = scmp.ne.s32.totalorder %s1012_s3, %s909_s28  ;;  %p913_p2 = scmp.lt.u32.totalorder %s909_s28, %s1012_s3 }
 0x232   :  { %p915_p3 = pnand %p913_p2, %p910_p1 }
 0x234   :  { %918 = shalt.err (!%p915_p3)
}
 0x235   :  { %554 = dma.vmem_to_hbm [thread:$0]  %s552_s23, 16, %s1012_s3, [#allocation4]  }
 0x236   :  { %923 = dma.done.wait [#allocation4], 16  }
 0x237   :  { %924 = vsyncadd [#allocation4], 4294967280 }
 0x238   :  { %558 = vsyncpa [#allocation3], 1 }
 0x239   :  { %559 = vsyncpa [#allocation6], 1 }
 0x23a   :  { %560 = vsyncpa [#allocation4], 1 }

</bundles_post_ra>
